<compile_context>
chip_gen: v5e
topology: v5e:2x2
jax: 0.10.0
libtpu: 0.0.40
codegen_flags: <defaults>
</compile_context>

<pallas_src>
import jax
import jax.numpy as jnp
from jax.experimental import pallas as pl
from jax.experimental.pallas import tpu as pltpu

ALPHA = 0.2            # LeakyReLU negative slope
NEG_BIG = -9.0e15      # mask value used by the PyTorch module


# ---------------------------------------------------------------------------
# Kernel 1: h = x @ W   (row-tiled)
# ---------------------------------------------------------------------------
def h_kernel(x_ref, w_ref, h_ref):
    # One-shot O(N*in*F) matmul; kept in f32 for accuracy (cast operands to
    # bf16 here as well if in_features ever becomes the FLOP bottleneck).
    h_ref[...] = jnp.dot(x_ref[...], w_ref[...],
                         preferred_element_type=jnp.float32)


# ---------------------------------------------------------------------------
# Kernel 2: flash-style masked attention + neighborhood aggregation + ELU
# ---------------------------------------------------------------------------
def gat_attn_kernel(tile_mask_ref,                        # scalar prefetch (SMEM) [nq*nk]
                    adj_ref, hq_ref, hk_ref, a_pair_ref,  # VMEM input tiles
                    out_ref,                              # VMEM output tile
                    m_sc, l_sc, acc_sc):                  # VMEM scratch
    qi = pl.program_id(0)
    ki = pl.program_id(1)
    nk = pl.num_programs(1)

    @pl.when(ki == 0)
    def _init():
        m_sc[...] = jnp.full(m_sc.shape, -jnp.inf, dtype=m_sc.dtype)
        l_sc[...] = jnp.zeros(l_sc.shape, dtype=l_sc.dtype)
        acc_sc[...] = jnp.zeros(acc_sc.shape, dtype=acc_sc.dtype)

    # Block-sparse skip: an adjacency tile with no edges contributes exactly 0
    # to every row that has at least one edge somewhere (self-loops guarantee
    # that), so skip its exp()/MXU work entirely.
    @pl.when(tile_mask_ref[qi * nk + ki] > 0)
    def _compute():
        h_q = hq_ref[...]                         # (TQ, F) f32
        h_k = hk_ref[...]                         # (TK, F) f32
        a_self_row = a_pair_ref[0:1, :]           # (1, F)
        a_neighs_row = a_pair_ref[1:2, :]         # (1, F)

        # Per-node attention logits on the VPU/XLU (frees MXU lanes).
        attn_self = jnp.sum(h_q * a_self_row, axis=1, keepdims=True)      # (TQ,1)
        attn_neighs = jnp.sum(h_k * a_neighs_row, axis=1, keepdims=True)  # (TK,1)

        s = attn_self + attn_neighs.T                                     # (TQ,TK)
        s = jnp.where(s > 0, s, ALPHA * s)                                # LeakyReLU
        s = jnp.where(adj_ref[...] > 0, s, NEG_BIG)                       # adjacency mask

        # Online softmax update.
        m_prev = m_sc[...]
        m_new = jnp.maximum(m_prev, jnp.max(s, axis=1, keepdims=True))
        corr = jnp.exp(m_prev - m_new)
        p = jnp.exp(s - m_new)                                            # (TQ,TK)
        l_sc[...] = corr * l_sc[...] + jnp.sum(p, axis=1, keepdims=True)
        # FLOP-dominant matmul: bf16 operands, f32 accumulation on the MXU.
        acc_sc[...] = corr * acc_sc[...] + jnp.dot(
            p.astype(jnp.bfloat16), h_k.astype(jnp.bfloat16),
            preferred_element_type=jnp.float32)
        m_sc[...] = m_new

    @pl.when(ki == nk - 1)
    def _finalize():
        # Guard rows that saw no processed edges (padded rows / isolated nodes
        # under tile-skipping); real rows always contain their self-loop.
        denom = jnp.where(l_sc[...] > 0, l_sc[...], 1.0)
        hp = acc_sc[...] * pl.reciprocal(denom, approx=True)
        # ELU (concat=True). Clamp the exp argument so the dead branch never
        # produces inf.
        out_ref[...] = jnp.where(
            hp > 0, hp, jnp.exp(jnp.minimum(hp, 0.0)) - 1.0
        ).astype(out_ref.dtype)

    # TODO(synk): breadth_policy==True branch (data-dependent per-row top-k
    # threshold on the attention weights, using `action`) is not implemented;
    # the default forward path (breadth_policy=None) never executes it.


# ---------------------------------------------------------------------------
# Wrapper
# ---------------------------------------------------------------------------
def reinforced_gat_layer(x, adj, W, a_self, a_neighs, *, tile=128):
    N, in_f = x.shape
    F = W.shape[1]
    T = tile
    Np = ((N + T - 1) // T) * T
    nt = Np // T

    x = x.astype(jnp.float32)
    W = W.astype(jnp.float32)

    # int8 adjacency mask: 4x less HBM traffic than f32 for the dominant stream.
    adj_i8 = (adj > 0).astype(jnp.int8)
    if Np != N:
        x = jnp.pad(x, ((0, Np - N), (0, 0)))
        adj_i8 = jnp.pad(adj_i8, ((0, Np - N), (0, Np - N)))

    # Per-(q-tile, k-tile) occupancy bitmap for block-sparse tile skipping.
    # Flattened to 1D so the SMEM footprint stays minimal.
    tile_mask = (adj_i8.astype(jnp.int32)
                 .reshape(nt, T, nt, T).sum(axis=(1, 3)) > 0)
    tile_mask = tile_mask.astype(jnp.int32).reshape(-1)

    # Pack the two [F,1] attention vectors into one lane-major (2, F) array.
    a_pair_t = jnp.concatenate([a_self, a_neighs], axis=1).T.astype(jnp.float32)

    # ---- kernel 1: h = x @ W ------------------------------------------------
    h = pl.pallas_call(
        h_kernel,
        out_shape=jax.ShapeDtypeStruct((Np, F), jnp.float32),
        grid_spec=pltpu.PrefetchScalarGridSpec(
            num_scalar_prefetch=0,
            grid=(nt,),
            in_specs=[pl.BlockSpec((T, in_f), lambda i: (i, 0)),
                      pl.BlockSpec((in_f, F), lambda i: (0, 0))],
            out_specs=pl.BlockSpec((T, F), lambda i: (i, 0)),
        ),
        compiler_params=pltpu.CompilerParams(
            dimension_semantics=("parallel",)),
    )(x, W)

    # ---- kernel 2: flash-style masked attention ------------------------------
    out = pl.pallas_call(
        gat_attn_kernel,
        out_shape=jax.ShapeDtypeStruct((Np, F), jnp.float32),
        grid_spec=pltpu.PrefetchScalarGridSpec(
            num_scalar_prefetch=1,                        # tile_mask -> SMEM
            grid=(nt, nt),                                # (q tiles, k tiles)
            in_specs=[
                pl.BlockSpec((T, T), lambda qi, ki, tm: (qi, ki)),   # adj tile (int8)
                pl.BlockSpec((T, F), lambda qi, ki, tm: (qi, 0)),    # h_q (resident per q row)
                pl.BlockSpec((T, F), lambda qi, ki, tm: (ki, 0)),    # h_k (streamed)
                pl.BlockSpec((2, F), lambda qi, ki, tm: (0, 0)),     # packed a vectors
            ],
            out_specs=pl.BlockSpec((T, F), lambda qi, ki, tm: (qi, 0)),
            scratch_shapes=[
                pltpu.VMEM((T, 1), jnp.float32),   # running row max
                pltpu.VMEM((T, 1), jnp.float32),   # running denom
                pltpu.VMEM((T, F), jnp.float32),   # output accumulator
            ],
        ),
        compiler_params=pltpu.CompilerParams(
            dimension_semantics=("parallel", "arbitrary"),
            # T=128 tiles use <1 MiB; raise this (and T, up to ~512 within
            # v7x's 64 MiB VMEM, larger on v5e/v6e) for big graphs.
            vmem_limit_bytes=32 * 1024 * 1024,
        ),
    )(tile_mask, adj_i8, h, h, a_pair_t)

    return out[:N]


# ---------------------------------------------------------------------------
# Reference / test
# ---------------------------------------------------------------------------
def xavier_uniform(key, shape, gain=1.414):
    fan_in, fan_out = shape[0], shape[1]
    bound = gain * jnp.sqrt(6.0 / (fan_in + fan_out))
    return jax.random.uniform(key, shape, jnp.float32, -bound, bound)


def reference_forward(x, adj, W, a_self, a_neighs):
    """Pure-JAX f32 reference mirroring the PyTorch forward
    (breadth_policy=None, concat=True)."""
    h = x @ W
    e = (h @ a_self) + (h @ a_neighs).T
    e = jnp.where(e > 0, e, ALPHA * e)
    masked = jnp.where(adj > 0, e, NEG_BIG)
    attention = jax.nn.softmax(masked, axis=1)
    h_prime = attention @ h
    return jnp.where(h_prime > 0, h_prime, jnp.expm1(h_prime))


if __name__ == "__main__":
    N = 256             # number of nodes (2 x 2 tile grid)
    in_features = 32
    out_features = 128  # lane-dense output (>=128); pack heads to reach this in practice

    key = jax.random.PRNGKey(0)
    k_x, k_adj, k_w, k_as, k_an = jax.random.split(key, 5)

    x = jax.random.normal(k_x, (N, in_features), jnp.float32)
    # random sparse-ish adjacency; zero out one 128x128 tile so the
    # block-sparse skip path is exercised; keep self loops.
    adj = (jax.random.uniform(k_adj, (N, N)) < 0.1).astype(jnp.float32)
    adj = adj.at[:128, 128:].set(0.0)
    adj = jnp.maximum(adj, jnp.eye(N, dtype=jnp.float32))

    W = xavier_uniform(k_w, (in_features, out_features))
    a_self = xavier_uniform(k_as, (out_features, 1))
    a_neighs = xavier_uniform(k_an, (out_features, 1))

    out = reinforced_gat_layer(x, adj, W, a_self, a_neighs)
    out = jax.block_until_ready(out)

    ref = reference_forward(x, adj, W, a_self, a_neighs)
    assert out.shape == (N, out_features)
    max_err = jnp.max(jnp.abs(out - ref))
    # attention @ h runs in bf16 on the MXU and normalization uses the EUP
    # approx reciprocal -> small deviation vs the f32 reference.
    assert jnp.allclose(out, ref, atol=5e-2, rtol=5e-2), (
        f"mismatch vs reference, max abs err = {max_err}")

    print("KERNEL_OK")
</pallas_src>

<mosaic_0001>
module attributes {stable_mosaic.version = 11 : i64} {
  func.func @h_kernel(%arg0: i32, %arg1: memref<128x32xf32, #tpu.memory_space<vmem>>, %arg2: memref<32x128xf32, #tpu.memory_space<vmem>>, %arg3: memref<128x128xf32, #tpu.memory_space<vmem>>) attributes {dimension_semantics = [#tpu.dimension_semantics<parallel>], iteration_bounds = array<i64: 2>, scalar_prefetch = 0 : i64, scratch_operands = 0 : i64, tpu.core_type = #tpu.core_type<tc>, window_params = [{transform_indices = @transform_0, window_bounds = array<i64: 128, 32>}, {pipeline_mode = #tpu.pipeline_mode<synchronous>, transform_indices = @transform_1, window_bounds = array<i64: 32, 128>}, {transform_indices = @transform_2, window_bounds = array<i64: 128, 128>}]} {
    %c0 = arith.constant 0 : index
    %c0_0 = arith.constant 0 : index
    %0 = vector.load %arg1[%c0, %c0_0] : memref<128x32xf32, #tpu.memory_space<vmem>>, vector<128x32xf32>
    %c0_1 = arith.constant 0 : index
    %c0_2 = arith.constant 0 : index
    %1 = vector.load %arg2[%c0_1, %c0_2] : memref<32x128xf32, #tpu.memory_space<vmem>>, vector<32x128xf32>
    %cst = arith.constant dense<0.000000e+00> : vector<128x128xf32>
    %2 = tpu.matmul %0, %1, %cst {dimension_numbers = #tpu.dot_dimension_numbers<[1], [0], [0], [1], [0, 0, 1, 1], [], []>} : vector<128x32xf32>, vector<32x128xf32>, vector<128x128xf32> -> vector<128x128xf32>
    %c0_3 = arith.constant 0 : index
    %c0_4 = arith.constant 0 : index
    %3 = vector.load %arg3[%c0_3, %c0_4] : memref<128x128xf32, #tpu.memory_space<vmem>>, vector<128x128xf32>
    tpu.vector_store %arg3[%c0_3, %c0_4], %2 {strides = array<i32>} : memref<128x128xf32, #tpu.memory_space<vmem>>, vector<128x128xf32>,
    return
  }
  func.func @transform_0(%arg0: i32) -> (i32, i32) {
    %c0_i32 = arith.constant 0 : i32
    %c0_i32_0 = arith.constant 0 : i32
    return %arg0, %c0_i32 : i32, i32
  }
  func.func @transform_1(%arg0: i32) -> (i32, i32) {
    %c0_i32 = arith.constant 0 : i32
    %c0_i32_0 = arith.constant 0 : i32
    %c0_i32_1 = arith.constant 0 : i32
    return %c0_i32, %c0_i32_0 : i32, i32
  }
  func.func @transform_2(%arg0: i32) -> (i32, i32) {
    %c0_i32 = arith.constant 0 : i32
    %c0_i32_0 = arith.constant 0 : i32
    return %arg0, %c0_i32 : i32, i32
  }
}

</mosaic_0001>

<bundles_post_ra>
// kernel: tpu_custom_call.1
= control target key start
LH: loop header
LB: loop body
LE: loop exit
PB: predicated region body
PF: predicated region fallthrough
CT: control target
= control target key end

     0   :  { %7 = vsyncpa [#allocation3], 0  ;;  %s689_s0 = inlined_call_operand.vmem [shape: f32[256,32], index: 0, kind: input, shape index: {}]   ;;  %s690_s1 = inlined_call_operand.vmem [shape: f32[32,128], index: 1, kind: input, shape index: {}]   ;;  %s691_s2 = inlined_call_operand.hbm [shape: f32[256,128], index: 2, kind: output, shape index: {}]  }
   0x1   :  { %9 = vsyncpa [#allocation3 + $0x1], 0  ;;  %s536_s9 = smov 0   ;;  %s538_s10 = smov 0  }
   0x2   :  { %s540_s11 = smov 0   ;;  %s542_s12 = smov 0  }
   0x3 LB: > { %s557_s13 = sadd.s32 4294967295, %s517_s12   ;;  %s373_s14 = sadd.s32 4294967294, %s517_s12   ;;  %s517_s12 = sphi %s542_s12, %s697_s12   ;;  %s513_s11 = sphi %s540_s11, %s696_s11   ;;  %s509_s10 = sphi %s538_s10, %s695_s10   ;;  %s505_s9 = sphi %s536_s9, %s694_s9  }
   0x4   : > { %s561_s15 = sadd.s32 1, %s517_s12   ;;  %s69_s16 = sadd.s32 1, %s513_s11 }
   0x5   : > { %s66_s17 = ssub.s32 %s517_s12, %s561_s15  ;;  %p79_p0 = scmp.ne.s32.totalorder %s513_s11, %s509_s10 }
   0x6   : > { %p67_p1 = scmp.eq.s32.totalorder %s66_s17, 0  ;;  %p80_p2 = scmp.eq.s32.totalorder %s557_s13, 1 }
   0x7   : > { %p85_p3 = scmp.ne.s32.totalorder %s509_s10, %s505_s9  ;;  %p86_p4 = scmp.eq.s32.totalorder %s373_s14, 1 }
   0x8   : > { %s572_s18 = scalar_select %p67_p1, %s513_s11, %s69_s16  }
   0x9   : > { %p574_p5 = por %p80_p2, %p79_p0  ;;  %p578_p6 = por %p86_p4, %p85_p3 }
   0xa   : > { %p376_p7 = scmp.ge.s32.totalorder %s517_s12, 1  ;;  %p116_p8 = scmp.lt.s32.totalorder %s517_s12, 3 }
   0xc   : > { %p117_p9 = pnand %p376_p7, %p116_p8 }
   0xd   : > { %s378_s25 = sshll.u32 (!%p117_p9), %s557_s13, 4  ;;  %s135_s6 = sand.u32 (!%p117_p9), 1, %s509_s10  }
   0xe   : > { %120 = sbr.rel (%p117_p9) target bundleno = 188 (0xbc), region = 28  ;;  %p139_p10 = scmp.lt.s32.totalorder (!%p117_p9), %s378_s25, 31 }
   0xf   : > { %s377_s7 = sshll.u32 (!%p117_p9), %s135_s6, 7  ;;  %s401_s14 = sshll.u32 (!%p117_p9), %s557_s13, 7 }
  0x10   : > { %s637_s8 = scalar_lea.vmem (!%p117_p9), [#allocation2], %s377_s7  ;;  %s307_s21 = scalar_lea.hbm (!%p117_p9), %s691_s2, %s401_s14 }
  0x11   : > { %s308_s22 = sshll.u32 (!%p117_p9), %s637_s8, 4  ;;  %s310_s23 = sshll.u32 (!%p117_p9), %s307_s21, 4  ;;  %s309_s22 = int_to_ptr.vmem [resolvable:$true] %s308_s22  ;;  %s311_s23 = int_to_ptr.hbm [resolvable:$true] %s310_s23 }
  0x12   : > { %s296_s13 = scalar_lea.sflag (!%p117_p9), [#allocation3], %s135_s6  ;;  %s469_s24 = sshra.s32 (!%p117_p9), %s311_s23, 4  ;;  %s470_s24 = int_to_ptr.hbm [resolvable:$true] %s469_s24 }
  0x13   : > { %v164_v0 = vld [vmem:[%s690_s1 + $0x18] sm:$0xff]  ;;  %v163_v1 = vld [vmem:[%s690_s1 + $0x10] sm:$0xff]  ;;  %v162_v2 = vld [vmem:[%s690_s1 + $0x8] sm:$0xff]  ;;  %s699_s25 = smov (!%p139_p10, %s378_s25), 31  ;;  %vm165_vm0 = vcmask 261120   ;;  %s475_s28 = scalar_lea.hbm %s691_s2, 256 }
  0x14   : > { %403 = vmatpush.msra.mxu2 %v164_v0  ;;  %404 = vmatpush.msra.mxu3 %v164_v0  ;;  %v161_v3 = vld [vmem:[%s690_s1] sm:$0xff]  ;;  %s379_s30 = sshll.u32 %s699_s25, 3  ;;  %s471_s25 = scalar_lea.hbm %s470_s24, 128 }
  0x15   : > { %226 = vmatpush.msra.mxu0 %v164_v0  ;;  %402 = vmatpush.msra.mxu1 %v164_v0  ;;  %s600_s5 = scalar_lea.vmem %s689_s0, %s379_s30  ;;  %p472_p11 = scmp.ne.s32.totalorder %s470_s24, %s471_s25 }
  0x16   : > { %406 = vmatpush.msra.mxu2 %v163_v1  ;;  %407 = vmatpush.msra.mxu3 %v163_v1  ;;  %v153_v4 = vld [vmem:[%s600_s5 + $0x40] sm:$0xff]  ;;  %v154_v8 = vld [vmem:[%s600_s5 + $0x48] sm:$0xff]  ;;  %v155_v12 = vld [vmem:[%s600_s5 + $0x50] sm:$0xff]  ;;  %p476_p0 = scmp.lt.s32.totalorder %s470_s24, %s691_s2  ;;  %p477_p1 = scmp.lt.s32.totalorder %s475_s28, %s471_s25 }
  0x17   : > { %227 = vmatpush.msra.mxu0 %v163_v1  ;;  %405 = vmatpush.msra.mxu1 %v163_v1  ;;  %v157_v5 = vld [vmem:[%s600_s5 + $0x60] sm:$0xff]  ;;  %v158_v9 = vld [vmem:[%s600_s5 + $0x68] sm:$0xff]  ;;  %v159_v13 = vld [vmem:[%s600_s5 + $0x70] sm:$0xff]  ;;  %p473_p12 = pnand %p472_p11, %p574_p5 }
  0x18   : > { %409 = vmatpush.msra.mxu2 %v162_v2  ;;  %410 = vmatpush.msra.mxu3 %v162_v2  ;;  %v145_v6 = vld [vmem:[%s600_s5] sm:$0xff]  ;;  %v146_v10 = vld [vmem:[%s600_s5 + $0x8] sm:$0xff]  ;;  %v147_v14 = vld [vmem:[%s600_s5 + $0x10] sm:$0xff]  ;;  %p478_p2 = por %p477_p1, %p476_p0 }
  0x19   : > { %228 = vmatpush.msra.mxu0 %v162_v2  ;;  %408 = vmatpush.msra.mxu1 %v162_v2  ;;  %v149_v7 = vld [vmem:[%s600_s5 + $0x20] sm:$0xff]  ;;  %v150_v11 = vld [vmem:[%s600_s5 + $0x28] sm:$0xff]  ;;  %v151_v15 = vld [vmem:[%s600_s5 + $0x30] sm:$0xff]  ;;  %p474_p13 = pneg %p473_p12 }
  0x1a   : > { %412 = vmatpush.msra.mxu2 %v161_v3  ;;  %413 = vmatpush.msra.mxu3 %v161_v3  ;;  %v156_v16 = vld [vmem:[%s600_s5 + $0x58] sm:$0xff] }
  0x1b   : > { %388 = vmatmul.msk.f32.vlgmr.msra.gmra.mxu2 %vm165_vm0, %v153_v4  ;;  %392 = vmatmul.msk.f32.vlgmr.msra.gmra.mxu3 %vm165_vm0, %v157_v5  ;;  %v160_v17 = vld [vmem:[%s600_s5 + $0x78] sm:$0xff]  ;;  %p479_p3 = pnand %p478_p2, %p474_p13 }
  0x1c   : > { %229 = vmatpush.msra.mxu0 %v161_v3  ;;  %411 = vmatpush.msra.mxu1 %v161_v3  ;;  %v148_v18 = vld [vmem:[%s600_s5 + $0x18] sm:$0xff] }
  0x1d   : > { %380 = vmatmul.msk.f32.vlgmr.msra.gmra.mxu0 %vm165_vm0, %v145_v6  ;;  %384 = vmatmul.msk.f32.vlgmr.msra.gmra.mxu1 %vm165_vm0, %v149_v7  ;;  %v152_v19 = vld [vmem:[%s600_s5 + $0x38] sm:$0xff] }
  0x23   : > { %389 = vmatmul.msk.f32.gmra.mxu2 %vm165_vm0, %v154_v8  ;;  %393 = vmatmul.msk.f32.gmra.mxu3 %vm165_vm0, %v158_v9 }
  0x25   : > { %381 = vmatmul.msk.f32.gmra.mxu0 %vm165_vm0, %v146_v10  ;;  %385 = vmatmul.msk.f32.gmra.mxu1 %vm165_vm0, %v150_v11 }
  0x2b   : > { %390 = vmatmul.msk.f32.gmra.mxu2 %vm165_vm0, %v155_v12  ;;  %394 = vmatmul.msk.f32.gmra.mxu3 %vm165_vm0, %v159_v13 }
  0x2d   : > { %382 = vmatmul.msk.f32.gmra.mxu0 %vm165_vm0, %v147_v14  ;;  %386 = vmatmul.msk.f32.gmra.mxu1 %vm165_vm0, %v151_v15 }
  0x33   : > { %391 = vmatmul.msk.f32.gmra.mxu2 %vm165_vm0, %v156_v16  ;;  %395 = vmatmul.msk.f32.gmra.mxu3 %vm165_vm0, %v160_v17 }
  0x35   : > { %383 = vmatmul.msk.f32.gmra.mxu0 %vm165_vm0, %v148_v18  ;;  %387 = vmatmul.msk.f32.gmra.mxu1 %vm165_vm0, %v152_v19 }
  0x9a   : > { %v231_v20 = vpop.f32.mrf.mxu0  ;;  %v243_v21 = vpop.f32.mrf.mxu1 }
  0x9b   : > { %279 = vst [vmem:[%s637_s8] sm:$0xff] %v231_v20 }
  0x9c   : > { %283 = vst [vmem:[%s637_s8 + $0x20] sm:$0xff] %v243_v21 }
  0x9e   : > { %v255_v22 = vpop.f32.mrf.mxu2  ;;  %v267_v23 = vpop.f32.mrf.mxu3 }
  0x9f   : > { %287 = vst [vmem:[%s637_s8 + $0x40] sm:$0xff] %v255_v22 }
  0xa0   : > { %291 = vst [vmem:[%s637_s8 + $0x60] sm:$0xff] %v267_v23 }
  0xa2   : > { %v234_v24 = vpop.f32.mrf.mxu0  ;;  %v246_v25 = vpop.f32.mrf.mxu1 }
  0xa3   : > { %280 = vst [vmem:[%s637_s8 + $0x8] sm:$0xff] %v234_v24 }
  0xa4   : > { %284 = vst [vmem:[%s637_s8 + $0x28] sm:$0xff] %v246_v25 }
  0xa6   : > { %v258_v26 = vpop.f32.mrf.mxu2  ;;  %v270_v27 = vpop.f32.mrf.mxu3 }
  0xa7   : > { %288 = vst [vmem:[%s637_s8 + $0x48] sm:$0xff] %v258_v26 }
  0xa8   : > { %292 = vst [vmem:[%s637_s8 + $0x68] sm:$0xff] %v270_v27 }
  0xaa   : > { %v237_v28 = vpop.f32.mrf.mxu0  ;;  %v249_v29 = vpop.f32.mrf.mxu1 }
  0xab   : > { %281 = vst [vmem:[%s637_s8 + $0x10] sm:$0xff] %v237_v28 }
  0xac   : > { %285 = vst [vmem:[%s637_s8 + $0x30] sm:$0xff] %v249_v29 }
  0xae   : > { %v261_v30 = vpop.f32.mrf.mxu2  ;;  %v273_v31 = vpop.f32.mrf.mxu3 }
  0xaf   : > { %289 = vst [vmem:[%s637_s8 + $0x50] sm:$0xff] %v261_v30 }
  0xb0   : > { %293 = vst [vmem:[%s637_s8 + $0x70] sm:$0xff] %v273_v31 }
  0xb2   : > { %v240_v32 = vpop.f32.mrf.mxu0  ;;  %v252_v33 = vpop.f32.mrf.mxu1 }
  0xb3   : > { %282 = vst [vmem:[%s637_s8 + $0x18] sm:$0xff] %v240_v32 }
  0xb4   : > { %286 = vst [vmem:[%s637_s8 + $0x38] sm:$0xff] %v252_v33 }
  0xb6   : > { %v264_v34 = vpop.f32.mrf.mxu2  ;;  %v276_v35 = vpop.f32.mrf.mxu3 }
  0xb7   : > { %290 = vst [vmem:[%s637_s8 + $0x58] sm:$0xff] %v264_v34 }
  0xb8   : > { %294 = vst [vmem:[%s637_s8 + $0x78] sm:$0xff] %v276_v35 }
  0xb9   : > { %482 = shalt.err (!%p479_p3)
}
  0xba   : > { %s519_s3 = smov 128   ;;  %s520_s4 = smov 8  }
  0xbb   : > { %414 = dma.vmem_to_hbm [thread:$0]  (%p574_p5), %s309_s22, 2048, %s311_s23, %s296_s13, %s519_s3, %s519_s3, %s520_s4  }
  0xbc PF: > { %p420_p4 = scmp.ge.s32.totalorder %s517_s12, 2  ;;  %s325_s5 = sand.u32 1, %s505_s9  }
  0xbd   : > { %s326_s6 = scalar_lea.sflag [#allocation3], %s325_s5 }
  0xbe   : > { %p417_p7 = pnand %p420_p4, %p578_p6 }
  0xc0   : > { %p418_p8 = pneg %p417_p7 }
  0xc2   : > { %500 = dma.done.wait (%p418_p8), %s326_s6, 2048  }
  0xc3   : > { %502 = vsyncadd (%p418_p8), %s326_s6, 4294965248  ;;  %p12_p9 = scmp.ge.s32.totalorder %s561_s15, 4   ;;  %s694_s9 = smov %s509_s10 }
  0xc4   : > { %s695_s10 = smov %s513_s11  ;;  %s696_s11 = smov %s572_s18 }
  0xc5   : > { %s697_s12 = smov %s561_s15  ;;  %14 = sbr.rel (!%p12_p9) target bundleno = 3 (0x3), region = 63 }
  0xca   :  { %332 = vsyncpa [#allocation3], 1 }
  0xcb   :  { %334 = vsyncpa [#allocation3 + $0x1], 1 }

</bundles_post_ra>
